<compile_context>
chip_gen: v7x
topology: tpu7x:2x2x1
jax: 0.10.0
libtpu: 0.0.40
codegen_flags: <defaults>
</compile_context>

<pallas_src>
import functools

import jax
import jax.numpy as jnp
from jax.experimental import pallas as pl
from jax.experimental.pallas import tpu as pltpu


def _ffn_kernel(x_ref, w1a_ref, b1a_ref, w1b_ref, b1b_ref, w2_ref, b2_ref,
                o_ref, *, eps: float, compute_dtype):
    # x_ref: (C, tl) tile -- channels on sublanes, pixels on lanes.
    x = x_ref[...].astype(jnp.float32)

    # --- LayerNorm2d: mean / biased variance over the channel (sublane) axis ---
    mu = jnp.mean(x, axis=0, keepdims=True)                 # (1, tl)
    xc = x - mu
    var = jnp.mean(xc * xc, axis=0, keepdims=True)          # (1, tl)
    y = (xc * jax.lax.rsqrt(var + eps)).astype(compute_dtype)   # affine folded into W1/b1

    # --- conv1x1_1 + SimpleGate, split at the weight level (no lane slice) ---
    ha = jnp.dot(w1a_ref[...], y, preferred_element_type=jnp.float32) + b1a_ref[...]
    hb = jnp.dot(w1b_ref[...], y, preferred_element_type=jnp.float32) + b1b_ref[...]
    g = (ha * hb).astype(compute_dtype)                     # (C//2, tl)

    # --- conv1x1_2 : (C, C//2) @ (C//2, tl) ---
    out = jnp.dot(w2_ref[...], g, preferred_element_type=jnp.float32) + b2_ref[...]

    # --- residual (re-read x in native dtype; keeps the f32 live range short) ---
    o_ref[...] = (out + x_ref[...].astype(jnp.float32)).astype(o_ref.dtype)


def ffn_block_pallas(x_nchw, gamma, beta, w1, b1, w2, b2, *, eps=1e-6,
                     tl=2048, compute_dtype=jnp.bfloat16):
    """x_nchw: (N, C, H, W).  w1: (C, C) conv1x1_1 weight (out, in).
    w2: (C, C//2) conv1x1_2 weight (out, in).  compute_dtype controls the
    MXU operand dtype (bf16 default; pass jnp.float32 for exact compute)."""
    N, C, H, W = x_nchw.shape
    assert C % 2 == 0, "SimpleGate requires an even channel count"
    half = C // 2
    L = H * W

    # Lane tile over pixels: multiple of 128, bounded by a VMEM budget
    # (~2 MiB per f32 (C, tl) intermediate) and by the padded pixel axis.
    tl = max(128, (int(tl) // 128) * 128)
    tl = min(tl, max(128, (((2 * 1024 * 1024) // (4 * C)) // 128) * 128))
    lp128 = ((L + 127) // 128) * 128
    tl = min(tl, lp128)
    Lp = ((L + tl - 1) // tl) * tl

    # NCHW -> (N, C, L): pure reshape, no transpose / extra HBM pass.
    x3 = x_nchw.reshape(N, C, L)
    if Lp != L:
        x3 = jnp.pad(x3, ((0, 0), (0, 0), (0, Lp - L)))

    cdt = compute_dtype
    # Fold the LN affine into the first conv (mathematically identical):
    #   W1' = W1 * gamma (per input channel),  b1' = b1 + W1 @ beta.
    gam = jnp.asarray(gamma, jnp.float32)
    bet = jnp.asarray(beta, jnp.float32)
    w1f = jnp.asarray(w1, jnp.float32) * gam[None, :]            # (C, C)
    b1f = jnp.asarray(b1, jnp.float32) + jnp.asarray(w1, jnp.float32) @ bet
    # Gate split done once in the wrapper on the (out, in) conv weights.
    w1a = w1f[:half, :].astype(cdt)                              # (C/2, C)
    w1b = w1f[half:, :].astype(cdt)                              # (C/2, C)
    b1a = b1f[:half].reshape(half, 1)                            # f32
    b1b = b1f[half:].reshape(half, 1)                            # f32
    w2c = jnp.asarray(w2, cdt)                                   # (C, C/2)
    b2r = jnp.asarray(b2, jnp.float32).reshape(C, 1)

    grid = (N, Lp // tl)
    const = lambda n, l: (0, 0)

    out3 = pl.pallas_call(
        functools.partial(_ffn_kernel, eps=eps, compute_dtype=cdt),
        out_shape=jax.ShapeDtypeStruct((N, C, Lp), x_nchw.dtype),
        grid_spec=pltpu.PrefetchScalarGridSpec(
            num_scalar_prefetch=0,
            grid=grid,
            in_specs=[
                pl.BlockSpec((None, C, tl), lambda n, l: (n, 0, l)),  # x tile
                pl.BlockSpec((half, C), const),     # W1 first half (gamma-folded)
                pl.BlockSpec((half, 1), const),     # b1 first half (beta-folded)
                pl.BlockSpec((half, C), const),     # W1 second half
                pl.BlockSpec((half, 1), const),     # b1 second half
                pl.BlockSpec((C, half), const),     # W2
                pl.BlockSpec((C, 1), const),        # b2
            ],
            out_specs=pl.BlockSpec((None, C, tl), lambda n, l: (n, 0, l)),
        ),
        compiler_params=pltpu.CompilerParams(
            dimension_semantics=("parallel", "parallel"),
            vmem_limit_bytes=48 * 1024 * 1024),
    )(x3, w1a, b1a, w1b, b1b, w2c, b2r)

    if Lp != L:
        out3 = out3[:, :, :L]
    return out3.reshape(N, C, H, W)


def _reference(x, gamma, beta, w1, b1, w2, b2, eps=1e-6):
    # pure-JAX NCHW reference mirroring the PyTorch forward
    mu = jnp.mean(x, axis=1, keepdims=True)
    var = jnp.mean((x - mu) ** 2, axis=1, keepdims=True)
    y = (x - mu) / jnp.sqrt(var + eps)
    y = gamma[None, :, None, None] * y + beta[None, :, None, None]
    h = jnp.einsum('oi,nihw->nohw', w1, y) + b1[None, :, None, None]
    c = h.shape[1]
    g = h[:, : c // 2] * h[:, c // 2:]
    out = jnp.einsum('oi,nihw->nohw', w2, g) + b2[None, :, None, None]
    return out + x


if __name__ == "__main__":
    key = jax.random.PRNGKey(0)
    N, C, H, W = 2, 4, 16, 16

    k = jax.random.split(key, 6)
    x = jax.random.normal(k[0], (N, C, H, W), jnp.float32)

    # deterministic synthetic parameters (shapes from nn.Conv2d / LayerNorm2d)
    gamma = jnp.ones((C,), jnp.float32)
    beta = jnp.zeros((C,), jnp.float32)
    w1 = jax.random.normal(k[1], (C, C), jnp.float32) * 0.2       # conv1x1_1 (out, in)
    b1 = jax.random.normal(k[2], (C,), jnp.float32) * 0.1
    w2 = jax.random.normal(k[3], (C, C // 2), jnp.float32) * 0.2  # conv1x1_2 (out, in)
    b2 = jax.random.normal(k[4], (C,), jnp.float32) * 0.1
    # TODO(synk): conv3x3 is defined in __init__ but never used in forward(); omitted.

    ref = _reference(x, gamma, beta, w1, b1, w2, b2)

    # Exact-compute path (f32 matmuls): tight tolerance.
    out_f32 = ffn_block_pallas(x, gamma, beta, w1, b1, w2, b2,
                               compute_dtype=jnp.float32)
    out_f32 = jax.block_until_ready(out_f32)
    assert out_f32.shape == (N, C, H, W)
    assert jnp.allclose(out_f32, ref, atol=1e-4, rtol=1e-4), "mismatch vs reference (f32)"

    # Default fast path (bf16 MXU operands): bf16-appropriate tolerance.
    out_bf16 = ffn_block_pallas(x, gamma, beta, w1, b1, w2, b2)
    out_bf16 = jax.block_until_ready(out_bf16)
    assert out_bf16.shape == (N, C, H, W)
    assert jnp.allclose(out_bf16, ref, atol=5e-2, rtol=5e-2), "mismatch vs reference (bf16)"

    print("KERNEL_OK")
</pallas_src>

<mosaic_0001>
module attributes {stable_mosaic.version = 11 : i64} {
  func.func @_ffn_kernel(%arg0: i32, %arg1: i32, %arg2: memref<1x4x256xf32, #tpu.memory_space<vmem>>, %arg3: memref<2x4xf32, #tpu.memory_space<vmem>>, %arg4: memref<2x1xf32, #tpu.memory_space<vmem>>, %arg5: memref<2x4xf32, #tpu.memory_space<vmem>>, %arg6: memref<2x1xf32, #tpu.memory_space<vmem>>, %arg7: memref<4x2xf32, #tpu.memory_space<vmem>>, %arg8: memref<4x1xf32, #tpu.memory_space<vmem>>, %arg9: memref<1x4x256xf32, #tpu.memory_space<vmem>>) attributes {dimension_semantics = [#tpu.dimension_semantics<parallel>, #tpu.dimension_semantics<parallel>], iteration_bounds = array<i64: 2, 1>, scalar_prefetch = 0 : i64, scratch_operands = 0 : i64, tpu.core_type = #tpu.core_type<tc>, window_params = [{transform_indices = @transform_0, window_bounds = array<i64: 1, 4, 256>}, {pipeline_mode = #tpu.pipeline_mode<synchronous>, transform_indices = @transform_1, window_bounds = array<i64: 2, 4>}, {pipeline_mode = #tpu.pipeline_mode<synchronous>, transform_indices = @transform_2, window_bounds = array<i64: 2, 1>}, {pipeline_mode = #tpu.pipeline_mode<synchronous>, transform_indices = @transform_3, window_bounds = array<i64: 2, 4>}, {pipeline_mode = #tpu.pipeline_mode<synchronous>, transform_indices = @transform_4, window_bounds = array<i64: 2, 1>}, {pipeline_mode = #tpu.pipeline_mode<synchronous>, transform_indices = @transform_5, window_bounds = array<i64: 4, 2>}, {pipeline_mode = #tpu.pipeline_mode<synchronous>, transform_indices = @transform_6, window_bounds = array<i64: 4, 1>}, {transform_indices = @transform_7, window_bounds = array<i64: 1, 4, 256>}]} {
    %c0 = arith.constant 0 : index
    %c0_0 = arith.constant 0 : index
    %c0_1 = arith.constant 0 : index
    %0 = vector.load %arg2[%c0, %c0_0, %c0_1] : memref<1x4x256xf32, #tpu.memory_space<vmem>>, vector<1x4x256xf32>
    %1 = vector.shape_cast %0 : vector<1x4x256xf32> to vector<4x256xf32>
    %cst = arith.constant dense<0.000000e+00> : vector<256xf32>
    %2 = vector.multi_reduction <add>, %1, %cst [0] : vector<4x256xf32> to vector<256xf32>
    %3 = vector.shape_cast %2 : vector<256xf32> to vector<1x256xf32>
    %cst_2 = arith.constant 4.000000e+00 : f32
    %4 = vector.broadcast %cst_2 : f32 to vector<1x256xf32>
    %5 = arith.divf %3, %4 : vector<1x256xf32>
    %6 = vector.broadcast %5 : vector<1x256xf32> to vector<4x256xf32>
    %7 = arith.subf %1, %6 : vector<4x256xf32>
    %8 = arith.mulf %7, %7 : vector<4x256xf32>
    %cst_3 = arith.constant dense<0.000000e+00> : vector<256xf32>
    %9 = vector.multi_reduction <add>, %8, %cst_3 [0] : vector<4x256xf32> to vector<256xf32>
    %10 = vector.shape_cast %9 : vector<256xf32> to vector<1x256xf32>
    %cst_4 = arith.constant 4.000000e+00 : f32
    %11 = vector.broadcast %cst_4 : f32 to vector<1x256xf32>
    %12 = arith.divf %10, %11 : vector<1x256xf32>
    %cst_5 = arith.constant 9.99999997E-7 : f32
    %13 = vector.broadcast %cst_5 : f32 to vector<1x256xf32>
    %14 = arith.addf %12, %13 : vector<1x256xf32>
    %15 = math.rsqrt %14 : vector<1x256xf32>
    %16 = vector.broadcast %15 : vector<1x256xf32> to vector<4x256xf32>
    %17 = arith.mulf %7, %16 : vector<4x256xf32>
    %c0_6 = arith.constant 0 : index
    %c0_7 = arith.constant 0 : index
    %18 = vector.load %arg3[%c0_6, %c0_7] : memref<2x4xf32, #tpu.memory_space<vmem>>, vector<2x4xf32>
    %cst_8 = arith.constant dense<0.000000e+00> : vector<2x256xf32>
    %19 = tpu.matmul %18, %17, %cst_8 {dimension_numbers = #tpu.dot_dimension_numbers<[1], [0], [0], [1], [0, 0, 1, 1], [], []>} : vector<2x4xf32>, vector<4x256xf32>, vector<2x256xf32> -> vector<2x256xf32>
    %c0_9 = arith.constant 0 : index
    %c0_10 = arith.constant 0 : index
    %20 = vector.load %arg4[%c0_9, %c0_10] : memref<2x1xf32, #tpu.memory_space<vmem>>, vector<2x1xf32>
    %21 = vector.broadcast %20 : vector<2x1xf32> to vector<2x256xf32>
    %22 = arith.addf %19, %21 : vector<2x256xf32>
    %c0_11 = arith.constant 0 : index
    %c0_12 = arith.constant 0 : index
    %23 = vector.load %arg5[%c0_11, %c0_12] : memref<2x4xf32, #tpu.memory_space<vmem>>, vector<2x4xf32>
    %cst_13 = arith.constant dense<0.000000e+00> : vector<2x256xf32>
    %24 = tpu.matmul %23, %17, %cst_13 {dimension_numbers = #tpu.dot_dimension_numbers<[1], [0], [0], [1], [0, 0, 1, 1], [], []>} : vector<2x4xf32>, vector<4x256xf32>, vector<2x256xf32> -> vector<2x256xf32>
    %c0_14 = arith.constant 0 : index
    %c0_15 = arith.constant 0 : index
    %25 = vector.load %arg6[%c0_14, %c0_15] : memref<2x1xf32, #tpu.memory_space<vmem>>, vector<2x1xf32>
    %26 = vector.broadcast %25 : vector<2x1xf32> to vector<2x256xf32>
    %27 = arith.addf %24, %26 : vector<2x256xf32>
    %28 = arith.mulf %22, %27 : vector<2x256xf32>
    %c0_16 = arith.constant 0 : index
    %c0_17 = arith.constant 0 : index
    %29 = vector.load %arg7[%c0_16, %c0_17] : memref<4x2xf32, #tpu.memory_space<vmem>>, vector<4x2xf32>
    %cst_18 = arith.constant dense<0.000000e+00> : vector<4x256xf32>
    %30 = tpu.matmul %29, %28, %cst_18 {dimension_numbers = #tpu.dot_dimension_numbers<[1], [0], [0], [1], [0, 0, 1, 1], [], []>} : vector<4x2xf32>, vector<2x256xf32>, vector<4x256xf32> -> vector<4x256xf32>
    %c0_19 = arith.constant 0 : index
    %c0_20 = arith.constant 0 : index
    %31 = vector.load %arg8[%c0_19, %c0_20] : memref<4x1xf32, #tpu.memory_space<vmem>>, vector<4x1xf32>
    %32 = vector.broadcast %31 : vector<4x1xf32> to vector<4x256xf32>
    %33 = arith.addf %30, %32 : vector<4x256xf32>
    %c0_21 = arith.constant 0 : index
    %c0_22 = arith.constant 0 : index
    %c0_23 = arith.constant 0 : index
    %34 = vector.load %arg2[%c0_21, %c0_22, %c0_23] : memref<1x4x256xf32, #tpu.memory_space<vmem>>, vector<1x4x256xf32>
    %35 = vector.shape_cast %34 : vector<1x4x256xf32> to vector<4x256xf32>
    %36 = arith.addf %33, %35 : vector<4x256xf32>
    %c0_24 = arith.constant 0 : index
    %c0_25 = arith.constant 0 : index
    %c0_26 = arith.constant 0 : index
    %37 = vector.load %arg9[%c0_24, %c0_25, %c0_26] : memref<1x4x256xf32, #tpu.memory_space<vmem>>, vector<1x4x256xf32>
    %38 = vector.shape_cast %37 : vector<1x4x256xf32> to vector<4x256xf32>
    %39 = vector.shape_cast %36 : vector<4x256xf32> to vector<1x4x256xf32>
    tpu.vector_store %arg9[%c0_24, %c0_25, %c0_26], %39 {strides = array<i32>} : memref<1x4x256xf32, #tpu.memory_space<vmem>>, vector<1x4x256xf32>,
    return
  }
  func.func @transform_0(%arg0: i32, %arg1: i32) -> (i32, i32, i32) {
    %c0_i32 = arith.constant 0 : i32
    %c0_i32_0 = arith.constant 0 : i32
    return %arg0, %c0_i32, %arg1 : i32, i32, i32
  }
  func.func @transform_1(%arg0: i32, %arg1: i32) -> (i32, i32) {
    %c0_i32 = arith.constant 0 : i32
    %c0_i32_0 = arith.constant 0 : i32
    %c0_i32_1 = arith.constant 0 : i32
    return %c0_i32, %c0_i32_0 : i32, i32
  }
  func.func @transform_2(%arg0: i32, %arg1: i32) -> (i32, i32) {
    %c0_i32 = arith.constant 0 : i32
    %c0_i32_0 = arith.constant 0 : i32
    %c0_i32_1 = arith.constant 0 : i32
    return %c0_i32, %c0_i32_0 : i32, i32
  }
  func.func @transform_3(%arg0: i32, %arg1: i32) -> (i32, i32) {
    %c0_i32 = arith.constant 0 : i32
    %c0_i32_0 = arith.constant 0 : i32
    %c0_i32_1 = arith.constant 0 : i32
    return %c0_i32, %c0_i32_0 : i32, i32
  }
  func.func @transform_4(%arg0: i32, %arg1: i32) -> (i32, i32) {
    %c0_i32 = arith.constant 0 : i32
    %c0_i32_0 = arith.constant 0 : i32
    %c0_i32_1 = arith.constant 0 : i32
    return %c0_i32, %c0_i32_0 : i32, i32
  }
  func.func @transform_5(%arg0: i32, %arg1: i32) -> (i32, i32) {
    %c0_i32 = arith.constant 0 : i32
    %c0_i32_0 = arith.constant 0 : i32
    %c0_i32_1 = arith.constant 0 : i32
    return %c0_i32, %c0_i32_0 : i32, i32
  }
  func.func @transform_6(%arg0: i32, %arg1: i32) -> (i32, i32) {
    %c0_i32 = arith.constant 0 : i32
    %c0_i32_0 = arith.constant 0 : i32
    %c0_i32_1 = arith.constant 0 : i32
    return %c0_i32, %c0_i32_0 : i32, i32
  }
  func.func @transform_7(%arg0: i32, %arg1: i32) -> (i32, i32, i32) {
    %c0_i32 = arith.constant 0 : i32
    %c0_i32_0 = arith.constant 0 : i32
    return %arg0, %c0_i32, %arg1 : i32, i32, i32
  }
}

</mosaic_0001>

<bundles_post_ra>
// kernel: tpu_custom_call.1
= control target key start
LH: loop header
LB: loop body
LE: loop exit
PB: predicated region body
PF: predicated region fallthrough
CT: control target
= control target key end

     0   :  { %12 = vsyncpa [#allocation3], 0  ;;  %s1087_s0 = inlined_call_operand.vmem [shape: f32[2,4,256], index: 0, kind: input, shape index: {}]   ;;  %s1088_s1 = inlined_call_operand.vmem [shape: f32[2,4], index: 1, kind: input, shape index: {}]   ;;  %s1089_s2 = inlined_call_operand.vmem [shape: f32[2,1], index: 2, kind: input, shape index: {}]   ;;  %s1090_s3 = inlined_call_operand.vmem [shape: f32[2,4], index: 3, kind: input, shape index: {}]   ;;  %s1091_s4 = inlined_call_operand.vmem [shape: f32[2,1], index: 4, kind: input, shape index: {}]   ;;  %s1092_s5 = inlined_call_operand.vmem [shape: f32[4,2], index: 5, kind: input, shape index: {}]   ;;  %s1093_s6 = inlined_call_operand.vmem [shape: f32[4,1], index: 6, kind: input, shape index: {}]   ;;  %s1094_s7 = inlined_call_operand.hbm [shape: f32[2,4,256], index: 7, kind: output, shape index: {}]  }
   0x1   :  { %14 = vsyncpa [#allocation3 + $0x1], 0  ;;  %s935_s24 = smov 0   ;;  %s937_s25 = smov 0  }
   0x2   :  { %s939_s26 = smov 0   ;;  %s941_s27 = smov 0  }
   0x3   :  { %s943_s28 = smov 0   ;;  %s945_s29 = smov 0  }
   0x4 LB: > { %s724_s30 = sadd.s32 4294967295, %s890_s29   ;;  %s725_s8 = sadd.s32 4294967294, %s890_s29   ;;  %s890_s29 = sphi %s945_s29, %s20_s29   ;;  %s886_s28 = sphi %s943_s28, %s1101_s28   ;;  %s882_s27 = sphi %s941_s27, %s1100_s27   ;;  %s878_s26 = sphi %s939_s26, %s1099_s26   ;;  %s874_s25 = sphi %s937_s25, %s1098_s25   ;;  %s870_s24 = sphi %s935_s24, %s1097_s24  }
   0x5   : > { %s32_s9 = sadd.s32 1, %s886_s28  ;;  %s195_s10 = sadd.s32 1, %s878_s26 }
   0x6   : > { %p34_p0 = scmp.ge.s32.totalorder %s32_s9, 2  ;;  %p205_p1 = scmp.ne.s32.totalorder %s878_s26, %s874_s25 }
   0x7   : > { %p206_p2 = scmp.eq.s32.totalorder %s724_s30, 1  ;;  %p211_p3 = scmp.ne.s32.totalorder %s874_s25, %s870_s24 }
   0x8   : > { %s1103_s9 = smov (%p34_p0, %s32_s9), 0  ;;  %p212_p5 = scmp.eq.s32.totalorder %s725_s8, 1 }
   0x9   : > { %p975_p4 = por %p206_p2, %p205_p1  ;;  %s190_s12 = ssub.s32 %s886_s28, %s1103_s9 }
   0xa   : > { %p728_p6 = scmp.ge.s32.totalorder %s890_s29, 1  ;;  %p193_p7 = scmp.eq.s32.totalorder %s190_s12, 0 }
   0xb   : > { %p982_p8 = por %p212_p5, %p211_p3  ;;  %p261_p9 = scmp.lt.s32.totalorder %s890_s29, 3 }
   0xc   : > { %s988_s14 = scalar_select %p193_p7, %s878_s26, %s195_s10  }
   0xd   : > { %p262_p10 = pnand %p728_p6, %p261_p9 }
   0xe   : > { %p298_p11 = scmp.lt.s32.totalorder (!%p262_p10), %s882_s27, 1  ;;  %v892_v0 = vmov (!%p262_p10), 0.0   ;;  %v365_v1 = vld [vmem:[%s1089_s2] sm:$0x3] (!%p262_p10)  ;;  %v893_v2 = vmov (!%p262_p10), 0   ;;  %vm312_vm0 = vcmask (!%p262_p10), 1043456  }
   0xf   : > { %265 = sbr.rel (%p262_p10) target bundleno = 540 (0x21c), region = 48  ;;  %445 = vmatprep.mubr.f32.mxu0 (!%p262_p10), %v892_v0  ;;  %526 = vmatprep.mubr.f32.mxu1 (!%p262_p10), %v892_v0  ;;  %v453_v3 = vld [vmem:[%s1091_s4] sm:$0x3] (!%p262_p10)  ;;  %vm373_vm1 = vcmask (!%p262_p10), 31744   ;;  %vm546_vm2 = vcmask (!%p262_p10), 1041408   ;;  %vm542_vm3 = vcmask (!%p262_p10), 15360  }
  0x10   : > { %805 = vset.pattern.permute.xlu0 (!%p262_p10), %v893_v2  ;;  %806 = vset.pattern.permute.xlu1 (!%p262_p10), %v893_v2  ;;  %v364_v49 = vld [vmem:[%s1088_s1] sm:$0x3] (!%p262_p10)  ;;  %s294_s19 = sand.u32 (!%p262_p10), 1, %s874_s25   ;;  %s747_s21 = sshll.u32 (!%p262_p10), %s882_s27, 7 }
  0x11   : > { %368 = vperm.xlu0 (!%p262_p10), %805, %v365_v1   ;;  %v452_v50 = vld [vmem:[%s1090_s3] sm:$0x3] (!%p262_p10)  ;;  %s729_s20 = sshll.u32 (!%p262_p10), %s294_s19, 3  ;;  %s1040_s10 = scalar_lea.hbm (!%p262_p10), %s1094_s7, %s747_s21 }
  0x12   : > { %v536_v51 = vld [vmem:[%s1093_s6] sm:$0xf] (!%p262_p10)  ;;  %s296_s22 = scalar_lea.vmem (!%p262_p10), [#allocation2], %s729_s20  ;;  %s632_s12 = scalar_lea.sflag (!%p262_p10), [#allocation3], %s294_s19 }
  0x13   : > { %539 = vperm.xlu1 (!%p262_p10), %806, %v536_v51  }
  0x15   : > { %456 = vperm.xlu0 (!%p262_p10), %805, %v453_v3  }
  0x16   : > { %s299_s17 = scalar_select %p298_p11, %s882_s27, 1 }
  0x17   : > { %s894_s27 = smov [#allocation2]  }
  0x18   : > { %s746_s18 = sshll.u32 %s299_s17, 3  ;;  %s816_s16 = sshll.u32 %s894_s27, 4  ;;  %s817_s16 = int_to_ptr.vmem [resolvable:$false] %s816_s16 }
  0x19   : > { %s305_s23 = scalar_lea.vmem %s1087_s0, %s746_s18  ;;  %s818_s17 = scalar_lea.vmem %s817_s16, 256 }
  0x1a   : > { %v1003_v4 = vld [vmem:[%s305_s23] sm:$0xff]  ;;  %s648_s23 = sshll.u32 %s296_s22, 4  ;;  %s1042_s23 = int_to_ptr.vmem [resolvable:$true] %s648_s23 }
  0x1b   : > { %v1007_v5 = vcombine.high %v1003_v4, %v1003_v4  ;;  %v313_v6 = vsel %vm312_vm0, %v1003_v4, 0.0  ;;  %s812_s15 = scalar_lea.vmem %s1042_s23, 128  ;;  %p819_p1 = scmp.lt.s32.totalorder %s1042_s23, %s817_s16 }
  0x1c   : > { %v314_v7 = vrot.slane %v313_v6, 4  ;;  %p813_p12 = scmp.ne.s32.totalorder %s1042_s23, %s812_s15  ;;  %p820_p2 = scmp.lt.s32.totalorder %s818_s17, %s812_s15 }
  0x1d   : > { %v320_v8 = vsel %vm312_vm0, %v1007_v5, 0.0 }
  0x1e   : > { %v315_v9 = vadd.f32 %v314_v7, %v313_v6  ;;  %v321_v10 = vrot.slane %v320_v8, 4  ;;  %p814_p13 = pnand %p813_p12, %p975_p4  ;;  %p821_p3 = por %p820_p2, %p819_p1 }
  0x20   : > { %v316_v11 = vrot.slane %v315_v9, 2  ;;  %v322_v12 = vadd.f32 %v321_v10, %v320_v8  ;;  %p815_p0 = pneg %p814_p13 }
  0x22   : > { %v317_v13 = vadd.f32 %v316_v11, %v315_v9  ;;  %v323_v14 = vrot.slane %v322_v12, 2  ;;  %p822_p5 = pnand %p821_p3, %p815_p0 }
  0x24   : > { %v318_v15 = vrot.slane %v317_v13, 1  ;;  %v324_v16 = vadd.f32 %v323_v14, %v322_v12 }
  0x26   : > { %v319_v17 = vadd.f32 %v318_v15, %v317_v13  ;;  %v325_v18 = vrot.slane %v324_v16, 1 }
  0x28   : > { %v326_v19 = vadd.f32 %v325_v18, %v324_v16  ;;  %v328_v20 = vmul.f32 0.25, %v319_v17 }
  0x2a   : > { %v329_v21 = vmul.f32 0.25, %v326_v19 }
  0x2c   : > { %v332_v22 = vcombine.low %v328_v20, %v329_v21 }
  0x2e   : > { %v334_v23 = vsub.f32 %v1003_v4, %v332_v22 }
  0x30   : > { %v335_v24 = vmul.f32 %v334_v23, %v334_v23 }
  0x32   : > { %v337_v25 = vcombine.high %v335_v24, %v335_v24  ;;  %v339_v26 = vsel %vm312_vm0, %v335_v24, 0.0 }
  0x33   : > { %v340_v27 = vrot.slane %v339_v26, 4 }
  0x34   : > { %v346_v28 = vsel %vm312_vm0, %v337_v25, 0.0 }
  0x35   : > { %v341_v29 = vadd.f32 %v340_v27, %v339_v26  ;;  %v347_v30 = vrot.slane %v346_v28, 4 }
  0x37   : > { %v342_v31 = vrot.slane %v341_v29, 2  ;;  %v348_v32 = vadd.f32 %v347_v30, %v346_v28 }
  0x39   : > { %v343_v33 = vadd.f32 %v342_v31, %v341_v29  ;;  %v349_v34 = vrot.slane %v348_v32, 2 }
  0x3b   : > { %v344_v35 = vrot.slane %v343_v33, 1  ;;  %v350_v36 = vadd.f32 %v349_v34, %v348_v32 }
  0x3d   : > { %v345_v37 = vadd.f32 %v344_v35, %v343_v33  ;;  %v351_v38 = vrot.slane %v350_v36, 1 }
  0x3f   : > { %v352_v39 = vadd.f32 %v351_v38, %v350_v36  ;;  %v353_v40 = vmul.f32 0.25, %v345_v37 }
  0x41   : > { %v354_v41 = vmul.f32 0.25, %v352_v39  ;;  %v355_v42 = vadd.f32 1e-06, %v353_v40 }
  0x43   : > { %v356_v43 = vadd.f32 1e-06, %v354_v41  ;;  %808 = vrsqrt.f32 %v355_v42 }
  0x45   : > { %810 = vrsqrt.f32 %v356_v43 }
  0x4d   : > { %v809_v44 = vpop.eup %808 }
  0x4f   : > { %v811_v45 = vpop.eup %810 }
  0x50   : > { %v361_v46 = vcombine.low %v809_v44, %v811_v45 }
  0x52   : > { %v363_v47 = vmul.f32 %v361_v46, %v334_v23 }
  0x54   : > { %v372_v48 = vcombine.high %v363_v47, %v363_v47 }
  0x56   : > { %732 = vmatprep.subr.msk.mxu0 %vm312_vm0, %v372_v48  ;;  %735 = vmatprep.subr.msk.mxu1 %vm312_vm0, %v372_v48 }
  0x57   : > { %733 = vmatpush1.msk.msra.mxu0 %vm312_vm0, %v363_v47  ;;  %736 = vmatpush1.msk.msra.mxu1 %vm312_vm0, %v363_v47 }
  0x58   : > { %734 = vmatmul.mubr.msk.f32.vlgmr.msra.gmra.mrb[0].mxu0 %vm373_vm1, %v364_v49  ;;  %737 = vmatmul.mubr.msk.f32.vlgmr.msra.gmra.mrb[0].mxu1 %vm373_vm1, %v452_v50 }
  0x59   : > { %617 = vmatprep.mubr.f32.mxu0 %v892_v0  ;;  %v535_v0 = vld [vmem:[%s1092_s5] sm:$0xf] }
  0x90   : > { %v369_v52 = vpop.permute.xlu0 %368 }
  0x92   : > { %v540_v1 = vpop.permute.xlu1 %539 }
  0x94   : > { %v457_v53 = vpop.permute.xlu0 %456 }
 0x12b   : > { %v447_v54 = vpop.f32.mrb[0].mxu0  ;;  %v528_v55 = vpop.f32.mrb[0].mxu1 }
 0x12c   : > { %v448_v56 = vadd.f32 %v447_v54, %v369_v52  ;;  %v529_v57 = vadd.f32 %v528_v55, %v457_v53  ;;  %v449_v58 = vpop.f32.mrb[1].mxu0  ;;  %v530_v59 = vpop.f32.mrb[1].mxu1 }
 0x12d   : > { %v450_v60 = vadd.f32 %v449_v58, %v369_v52  ;;  %v531_v61 = vadd.f32 %v530_v59, %v457_v53 }
 0x12e   : > { %v533_v62 = vmul.f32 %v529_v57, %v448_v56 }
 0x12f   : > { %v534_v63 = vmul.f32 %v531_v61, %v450_v60 }
 0x131   : > { %738 = vmatprep.subr.msk.mxu0 %vm546_vm2, %v534_v63 }
 0x132   : > { %739 = vmatpush1.msk.msra.mxu0 %vm546_vm2, %v533_v62 }
 0x133   : > { %740 = vmatmul.mubr.msk.f32.vlgmr.msra.gmra.mrb[2].mxu0 %vm542_vm3, %v535_v0 }
 0x206   : > { %v619_v2 = vpop.f32.mrb[2].mxu0 }
 0x207   : > { %v620_v3 = vadd.f32 %v619_v2, %v540_v1  ;;  %v621_v6 = vpop.f32.mrb[3].mxu0 }
 0x208   : > { %v622_v7 = vadd.f32 %v621_v6, %v540_v1 }
 0x209   : > { %v624_v8 = vadd.f32 %v620_v3, %v1003_v4 }
 0x20a   : > { %v625_v9 = vadd.f32 %v622_v7, %v1007_v5 }
 0x20c   : > { %v628_v10 = vcombine.low %v624_v8, %v625_v9 }
 0x20e   : > { %630 = vst [vmem:[%s296_s22] sm:$0xff] %v628_v10 }
 0x20f   : > { %825 = shalt.err (!%p822_p5)
}
 0x210   : > { %s826_s18 = scalar_lea.hbm %s1040_s10, 128  ;;  %s830_s21 = scalar_lea.hbm %s1094_s7, 256 }
 0x211   : > { %p827_p6 = scmp.ne.s32.totalorder %s1040_s10, %s826_s18  ;;  %p831_p10 = scmp.lt.u32.totalorder %s1040_s10, %s1094_s7 }
 0x212   : > { %p832_p11 = scmp.lt.u32.totalorder %s830_s21, %s826_s18  ;;  %p834_p13 = scmp.lt.u32.totalorder %s826_s18, %s1040_s10 }
 0x213   : > { %p828_p7 = pnand %p827_p6, %p975_p4 }
 0x214   : > { %p833_p12 = por %p832_p11, %p831_p10 }
 0x215   : > { %p829_p9 = pneg %p828_p7 }
 0x216   : > { %p835_p0 = por %p834_p13, %p833_p12 }
 0x218   : > { %p836_p1 = pnand %p835_p0, %p829_p9 }
 0x21a   : > { %839 = shalt.err (!%p836_p1)
}
 0x21b   : > { %748 = dma.vmem_to_hbm [thread:$0]  (%p975_p4), %s1042_s23, 128, %s1040_s10, %s632_s12  }
 0x21c PF: > { %p754_p2 = scmp.ge.s32.totalorder %s890_s29, 2  ;;  %s660_s8 = sand.u32 1, %s870_s24  }
 0x21d   : > { %s661_s15 = scalar_lea.sflag [#allocation3], %s660_s8 }
 0x21e   : > { %p751_p3 = pnand %p754_p2, %p982_p8 }
 0x220   : > { %865 = dma.done.wait (!%p751_p3), %s661_s15, 128  }
 0x221   : > { %867 = vsyncadd (!%p751_p3), %s661_s15, 4294967168  ;;  %s20_s29 = sadd.s32 1, %s890_s29   ;;  %s1097_s24 = smov %s874_s25 }
 0x222   : > { %p17_p5 = scmp.ge.s32.totalorder %s20_s29, 4   ;;  %s1098_s25 = smov %s878_s26 }
 0x223   : > { %s1099_s26 = smov %s988_s14  ;;  %s1100_s27 = smov %s886_s28 }
 0x224   : > { %s1101_s28 = smov %s1103_s9  ;;  %19 = sbr.rel (!%p17_p5) target bundleno = 4 (0x4), region = 83 }
 0x22b   :  { %666 = vsyncpa [#allocation3], 1 }
 0x22c   :  { %668 = vsyncpa [#allocation3 + $0x1], 1 }

</bundles_post_ra>
